<compile_context>
chip_gen: v6e
topology: v6e:2x2x1
jax: 0.10.0
libtpu: 0.0.40
codegen_flags: <defaults>
</compile_context>

<pallas_src>
import math
import functools

import jax
import jax.numpy as jnp
from jax import lax
from jax.experimental import pallas as pl
from jax.experimental.pallas import tpu as pltpu


def _round_up(x, m):
    return ((x + m - 1) // m) * m


def _chip_vmem_bytes():
    """Physical VMEM per TensorCore, with a conservative fallback."""
    try:
        return int(pltpu.get_tpu_info().vmem_capacity_bytes)
    except Exception:
        return 64 << 20          # v7x per-TensorCore (smallest of the three gens)


def _lane_multiple():
    """256 on v6e/v7x (2x256x256 MXU), 128 on v5e (4x128x128) / unknown."""
    try:
        kind = jax.devices()[0].device_kind.lower()
        if "v6" in kind or "v7" in kind:
            return 256
    except Exception:
        pass
    return 128


# ----------------------------------------------------------------------------
# Kernel
# ----------------------------------------------------------------------------
def mymodel_kernel(x_ref, wt_ref, b_ref, g_ref, beta_ref, o_ref, *,
                   inv_d, d_valid, dp):
    """Fused forward on one row-tile of flattened tokens.

    x_ref    : (TM, Dp)    bf16  tokens (Dp = D padded to a lane-dense multiple)
    wt_ref   : (2, Dp, Dp) bf16  folded, pre-transposed weights (y = x @ Wt + b)
    b_ref    : (2, Dp)     f32   folded biases           [FFN1, FFN2]
    g_ref    : (3, Dp)     f32   LayerNorm scales        [ffn1.ln, ffn2.ln, final ln]
    beta_ref : (3, Dp)     f32   LayerNorm biases
    o_ref    : (TM, Dp)          output tile

    Padded lanes (>= d_valid) are identically zero in x / weights / biases /
    gamma / beta, which keeps them zero through every matmul and LayerNorm.
    """
    bias = b_ref[...].astype(jnp.float32)      # hoisted: loaded once per tile
    gamma = g_ref[...].astype(jnp.float32)
    lbeta = beta_ref[...].astype(jnp.float32)

    if d_valid != dp:
        lane_mask = lax.broadcasted_iota(jnp.int32, (1, dp), 1) < d_valid
    else:
        lane_mask = None

    def layernorm(h, idx):
        # Padded lanes of h are exactly zero, so the plain sum divided by the
        # true feature count D gives the correct mean.  Two-pass variance
        # (center, then square) avoids the E[x^2]-E[x]^2 cancellation; the
        # centered padded lanes (-mu) are masked out of the variance sum.
        mu = jnp.sum(h, axis=-1, keepdims=True) * inv_d
        c = h - mu
        sq = c * c
        if lane_mask is not None:
            sq = jnp.where(lane_mask, sq, 0.0)
        var = jnp.sum(sq, axis=-1, keepdims=True) * inv_d
        hhat = c * lax.rsqrt(var + 1e-5)
        return hhat * gamma[idx:idx + 1, :] + lbeta[idx:idx + 1, :]

    # FFN1: folded linear chain (bf16 MXU, f32 accumulate) + its LayerNorm.
    w0 = wt_ref[0]
    h = jnp.dot(x_ref[...], w0, preferred_element_type=jnp.float32) + bias[0:1, :]
    h = layernorm(h, 0)

    # FFN2: folded linear chain + its LayerNorm.
    w1 = wt_ref[1]
    h = jnp.dot(h.astype(w1.dtype), w1,
                preferred_element_type=jnp.float32) + bias[1:2, :]
    h = layernorm(h, 1)

    # Final MyModel.ln
    h = layernorm(h, 2)
    o_ref[...] = h.astype(o_ref.dtype)


# ----------------------------------------------------------------------------
# Host-side prep + pallas_call wrapper
# ----------------------------------------------------------------------------
def fold_linear_chains(Wt, b):
    """Collapse each FFN's chain of (1 + nlayers) Linear(dim, dim) layers into a
    single weight / bias (there is no nonlinearity between them).

    Wt: (n_lin, D, D) pre-transposed weights (y = x @ Wt + b);  b: (n_lin, D).
    Returns (2, D, D) folded weights and (2, D) folded biases, in f32.
    """
    n_lin = Wt.shape[0]
    npf = n_lin // 2
    Wf, bf = [], []
    for f in range(2):
        W = Wt[f * npf]
        bb = b[f * npf]
        for li in range(f * npf + 1, (f + 1) * npf):
            W = W @ Wt[li]
            bb = bb @ Wt[li] + b[li]
        Wf.append(W)
        bf.append(bb)
    return jnp.stack(Wf), jnp.stack(bf)


def mymodel_forward(x, params, *, tile_m=None, matmul_dtype=jnp.bfloat16,
                    out_dtype=None):
    """x: (B, S, D) float32.  params = (Wt, b, g, beta) as from init_params.

    out_dtype defaults to x.dtype (PyTorch semantics); pass jnp.bfloat16 to
    halve output HBM traffic if the consumer accepts it.
    """
    Wt, b, g, beta = params
    B, S, D = x.shape
    N = B * S
    out_dtype = x.dtype if out_dtype is None else out_dtype

    # ---- fold linear chains and pad everything to a lane-dense layout -------
    Wf, bf = fold_linear_chains(Wt, b)                    # (2, D, D), (2, D)  f32
    lane = _lane_multiple()
    Dp = 128 if D <= 128 else _round_up(D, lane)

    # TODO(synk): when 2*Dp^2 bf16 folded weights no longer fit scoped VMEM
    # (~Dp>=3K on v7x, ~5K on v5e/v6e), stream weight K-tiles from HBM
    # (memory_space=pl.ANY + pltpu.emit_pipeline, one pass per FFN) instead of
    # keeping both weights resident.

    Wp = jnp.zeros((2, Dp, Dp), jnp.float32).at[:, :D, :D].set(Wf).astype(matmul_dtype)
    bp = jnp.zeros((2, Dp), jnp.float32).at[:, :D].set(bf)
    gp = jnp.zeros((3, Dp), jnp.float32).at[:, :D].set(g)
    betap = jnp.zeros((3, Dp), jnp.float32).at[:, :D].set(beta)

    x2d = x.reshape(N, D).astype(matmul_dtype)            # bf16 input: half the HBM read
    if Dp == D:
        xp = x2d                                          # skip the host-side pad copy
    else:
        xp = jnp.zeros((N, Dp), matmul_dtype).at[:, :D].set(x2d)

    # Row tile: large in the HBM/overhead-bound small/medium-D regime, clamped
    # so the grid has >= 2 steps when N allows (v7x megacore) and to a multiple
    # of 16 (bf16 sublane packing).
    if tile_m is None:
        tile_m = 1024 if Dp <= 512 else 256
    tm = min(tile_m,
             max(16, _round_up(pl.cdiv(N, 2), 16)),
             _round_up(N, 16))
    grid = (pl.cdiv(N, tm),)

    # Scoped VMEM: single-buffered constants + double-buffered x/out tiles +
    # in-kernel f32 temporaries, clamped to the chip's physical VMEM.
    w_item = jnp.dtype(matmul_dtype).itemsize
    out_item = jnp.dtype(out_dtype).itemsize
    vmem_bytes = (2 * Dp * Dp * w_item                    # folded weights (1 buffer)
                  + (2 + 3 + 3) * Dp * 4                  # bias / gamma / beta (1 buffer)
                  + 2 * tm * Dp * w_item                  # x tile (double-buffered)
                  + 2 * tm * Dp * out_item                # out tile (double-buffered)
                  + 8 * tm * Dp * 4)                      # f32 temporaries
    chip_vmem = _chip_vmem_bytes()
    vmem_limit = int(min(max(vmem_bytes + (4 << 20), 32 << 20),
                         chip_vmem - (2 << 20)))

    cost = pl.CostEstimate(
        flops=2 * 2 * N * Dp * Dp,                        # two (N,Dp)x(Dp,Dp) matmuls
        transcendentals=3 * N,                            # one rsqrt per row per LN
        bytes_accessed=int(N * Dp * (w_item + out_item)
                           + Wp.size * w_item + 8 * Dp * 4),
    )

    const = pl.Buffered(1)   # constant-index operands: never re-fetched -> 1 buffer
    kernel = functools.partial(mymodel_kernel, inv_d=1.0 / D, d_valid=D, dp=Dp)
    out = pl.pallas_call(
        kernel,
        out_shape=jax.ShapeDtypeStruct((N, Dp), out_dtype),
        grid_spec=pltpu.PrefetchScalarGridSpec(
            num_scalar_prefetch=0,
            grid=grid,
            in_specs=[
                pl.BlockSpec((tm, Dp), lambda i: (i, 0)),                      # x row tile
                pl.BlockSpec((2, Dp, Dp), lambda i: (0, 0, 0), pipeline_mode=const),  # weights
                pl.BlockSpec((2, Dp), lambda i: (0, 0), pipeline_mode=const),  # biases
                pl.BlockSpec((3, Dp), lambda i: (0, 0), pipeline_mode=const),  # LN scales
                pl.BlockSpec((3, Dp), lambda i: (0, 0), pipeline_mode=const),  # LN biases
            ],
            out_specs=pl.BlockSpec((tm, Dp), lambda i: (i, 0)),
        ),
        compiler_params=pltpu.CompilerParams(
            dimension_semantics=("parallel",),
            vmem_limit_bytes=vmem_limit,
        ),
        cost_estimate=cost,
    )(xp, Wp, bp, gp, betap)

    out2d = out if Dp == D else out[:, :D]                # skip slice when aligned
    return out2d.reshape(B, S, D)


# ----------------------------------------------------------------------------
# Parameter init + references
# ----------------------------------------------------------------------------
def init_params(key, nlayers, dim):
    """Deterministic synthetic init mirroring MyModel.__init__ post-processing:
    linear weights ~ N(0, 0.02) then scaled by sqrt(log(2*nlayers)); all biases
    zeroed; LayerNorm weights (=1) scaled by the same factor; LN biases zeroed."""
    init_scale = math.sqrt(math.log(nlayers * 2))
    n_lin_per_ffn = 1 + nlayers            # fc1 + nlayers multiway linears, per FFN
    n_lin = 2 * n_lin_per_ffn              # two FFNs
    keys = jax.random.split(key, n_lin)
    W = jnp.stack(
        [0.02 * jax.random.normal(keys[i], (dim, dim), jnp.float32) for i in range(n_lin)]
    ) * init_scale                         # (n_lin, out, in) like torch Linear.weight
    Wt = jnp.transpose(W, (0, 2, 1))       # pre-transpose so y = x @ Wt
    b = jnp.zeros((n_lin, dim), jnp.float32)
    g = jnp.full((3, dim), init_scale, jnp.float32)
    beta = jnp.zeros((3, dim), jnp.float32)
    return Wt, b, g, beta


def reference_forward_f32(x, params):
    """Pure-JAX, per-layer, f32 reference of the original PyTorch graph."""
    Wt, b, g, beta = params
    npf = Wt.shape[0] // 2

    def ln(h, i):
        mu = h.mean(-1, keepdims=True)
        var = ((h - mu) ** 2).mean(-1, keepdims=True)
        return (h - mu) / jnp.sqrt(var + 1e-5) * g[i] + beta[i]

    h = x
    li = 0
    for f in range(2):
        for _ in range(npf):
            h = h @ Wt[li] + b[li]
            li += 1
        h = ln(h, f)
    return ln(h, 2)


def reference_forward_matched(x, params, *, matmul_dtype=jnp.bfloat16):
    """Pure-JAX reference using the SAME folded-weight + bf16-matmul + two-pass
    LayerNorm math as the kernel (tight correctness check of the Pallas
    implementation itself)."""
    Wt, b, g, beta = params
    Wf, bf = fold_linear_chains(Wt, b)
    B, S, D = x.shape
    h = x.reshape(B * S, D)

    def ln(hh, i):
        mu = jnp.sum(hh, -1, keepdims=True) / D
        c = hh - mu
        var = jnp.sum(c * c, -1, keepdims=True) / D
        return c * lax.rsqrt(var + 1e-5) * g[i] + beta[i]

    h = jnp.dot(h.astype(matmul_dtype), Wf[0].astype(matmul_dtype),
                preferred_element_type=jnp.float32) + bf[0]
    h = ln(h, 0)
    h = jnp.dot(h.astype(matmul_dtype), Wf[1].astype(matmul_dtype),
                preferred_element_type=jnp.float32) + bf[1]
    h = ln(h, 1)
    h = ln(h, 2)
    return h.reshape(B, S, D)


# ----------------------------------------------------------------------------
if __name__ == "__main__":
    nlayers, dim = 2, 32
    B, S = 2, 8

    key = jax.random.PRNGKey(0)
    kx, kp = jax.random.split(key)
    x = jax.random.normal(kx, (B, S, dim), jnp.float32)
    params = init_params(kp, nlayers, dim)

    out = mymodel_forward(x, params)
    out = jax.block_until_ready(out)
    assert out.shape == (B, S, dim)
    assert out.dtype == x.dtype

    # Tight check vs a pure-JAX path doing the identical folded/bf16 math.
    ref_matched = reference_forward_matched(x, params)
    assert jnp.allclose(out, ref_matched, atol=2e-3, rtol=2e-3), \
        "Pallas kernel mismatch vs matched-precision reference"

    # Looser check vs the per-layer f32 reference (differences stem only from
    # bf16 MXU matmuls + host-side folding, by design).
    ref_f32 = reference_forward_f32(x, params)
    assert jnp.allclose(out, ref_f32, atol=5e-2, rtol=5e-2), \
        "Pallas kernel drifted too far from f32 per-layer reference"

    print("KERNEL_OK")
</pallas_src>

<mosaic_0001>
module attributes {stable_mosaic.version = 11 : i64} {
  func.func @mymodel_kernel(%arg0: i32, %arg1: memref<16x128xbf16, #tpu.memory_space<vmem>>, %arg2: memref<2x128x128xbf16, #tpu.memory_space<vmem>>, %arg3: memref<2x128xf32, #tpu.memory_space<vmem>>, %arg4: memref<3x128xf32, #tpu.memory_space<vmem>>, %arg5: memref<3x128xf32, #tpu.memory_space<vmem>>, %arg6: memref<16x128xf32, #tpu.memory_space<vmem>>) attributes {dimension_semantics = [#tpu.dimension_semantics<parallel>], iteration_bounds = array<i64: 1>, scalar_prefetch = 0 : i64, scratch_operands = 0 : i64, tpu.core_type = #tpu.core_type<tc>, window_params = [{transform_indices = @transform_0, window_bounds = array<i64: 16, 128>}, {pipeline_mode = #tpu.pipeline_mode<synchronous>, transform_indices = @transform_1, window_bounds = array<i64: 2, 128, 128>}, {pipeline_mode = #tpu.pipeline_mode<synchronous>, transform_indices = @transform_2, window_bounds = array<i64: 2, 128>}, {pipeline_mode = #tpu.pipeline_mode<synchronous>, transform_indices = @transform_3, window_bounds = array<i64: 3, 128>}, {pipeline_mode = #tpu.pipeline_mode<synchronous>, transform_indices = @transform_4, window_bounds = array<i64: 3, 128>}, {transform_indices = @transform_5, window_bounds = array<i64: 16, 128>}]} {
    %c0 = arith.constant 0 : index
    %c0_0 = arith.constant 0 : index
    %0 = vector.load %arg3[%c0, %c0_0] : memref<2x128xf32, #tpu.memory_space<vmem>>, vector<2x128xf32>
    %c0_1 = arith.constant 0 : index
    %c0_2 = arith.constant 0 : index
    %1 = vector.load %arg4[%c0_1, %c0_2] : memref<3x128xf32, #tpu.memory_space<vmem>>, vector<3x128xf32>
    %c0_3 = arith.constant 0 : index
    %c0_4 = arith.constant 0 : index
    %2 = vector.load %arg5[%c0_3, %c0_4] : memref<3x128xf32, #tpu.memory_space<vmem>>, vector<3x128xf32>
    %3 = tpu.iota {dimensions = array<i32: 1>} : vector<1x128xi32>
    %c32_i32 = arith.constant 32 : i32
    %4 = vector.broadcast %c32_i32 : i32 to vector<1x128xi32>
    %5 = arith.cmpi slt, %3, %4 : vector<1x128xi32>
    %c0_5 = arith.constant 0 : index
    %c0_6 = arith.constant 0 : index
    %c0_7 = arith.constant 0 : index
    %6 = vector.load %arg2[%c0_5, %c0_6, %c0_7] : memref<2x128x128xbf16, #tpu.memory_space<vmem>>, vector<1x128x128xbf16>
    %7 = vector.shape_cast %6 : vector<1x128x128xbf16> to vector<128x128xbf16>
    %c0_8 = arith.constant 0 : index
    %c0_9 = arith.constant 0 : index
    %8 = vector.load %arg1[%c0_8, %c0_9] : memref<16x128xbf16, #tpu.memory_space<vmem>>, vector<16x128xbf16>
    %cst = arith.constant dense<0.000000e+00> : vector<16x128xf32>
    %9 = tpu.matmul %8, %7, %cst {dimension_numbers = #tpu.dot_dimension_numbers<[1], [0], [0], [1], [0, 0, 1, 1], [], []>} : vector<16x128xbf16>, vector<128x128xbf16>, vector<16x128xf32> -> vector<16x128xf32>
    %10 = vector.extract_strided_slice %0 {offsets = [0, 0], sizes = [1, 128], strides = [1, 1]} : vector<2x128xf32> to vector<1x128xf32>
    %11 = vector.broadcast %10 : vector<1x128xf32> to vector<16x128xf32>
    %12 = arith.addf %9, %11 : vector<16x128xf32>
    %cst_10 = arith.constant dense<0.000000e+00> : vector<16xf32>
    %13 = vector.multi_reduction <add>, %12, %cst_10 [1] : vector<16x128xf32> to vector<16xf32>
    %14 = vector.shape_cast %13 : vector<16xf32> to vector<16x1xf32>
    %cst_11 = arith.constant 3.125000e-02 : f32
    %15 = vector.broadcast %cst_11 : f32 to vector<16x1xf32>
    %16 = arith.mulf %14, %15 : vector<16x1xf32>
    %17 = vector.broadcast %16 : vector<16x1xf32> to vector<16x128xf32>
    %18 = arith.subf %12, %17 : vector<16x128xf32>
    %19 = arith.mulf %18, %18 : vector<16x128xf32>
    %cst_12 = arith.constant 0.000000e+00 : f32
    %20 = vector.shape_cast %5 : vector<1x128xi1> to vector<1x128xi1>
    %21 = vector.broadcast %20 : vector<1x128xi1> to vector<16x128xi1>
    %22 = vector.broadcast %cst_12 : f32 to vector<16x128xf32>
    %23 = arith.select %21, %19, %22 : vector<16x128xi1>, vector<16x128xf32>
    %cst_13 = arith.constant dense<0.000000e+00> : vector<16xf32>
    %24 = vector.multi_reduction <add>, %23, %cst_13 [1] : vector<16x128xf32> to vector<16xf32>
    %25 = vector.shape_cast %24 : vector<16xf32> to vector<16x1xf32>
    %cst_14 = arith.constant 3.125000e-02 : f32
    %26 = vector.broadcast %cst_14 : f32 to vector<16x1xf32>
    %27 = arith.mulf %25, %26 : vector<16x1xf32>
    %cst_15 = arith.constant 9.99999974E-6 : f32
    %28 = vector.broadcast %cst_15 : f32 to vector<16x1xf32>
    %29 = arith.addf %27, %28 : vector<16x1xf32>
    %30 = math.rsqrt %29 : vector<16x1xf32>
    %31 = vector.broadcast %30 : vector<16x1xf32> to vector<16x128xf32>
    %32 = arith.mulf %18, %31 : vector<16x128xf32>
    %33 = vector.extract_strided_slice %1 {offsets = [0, 0], sizes = [1, 128], strides = [1, 1]} : vector<3x128xf32> to vector<1x128xf32>
    %34 = vector.broadcast %33 : vector<1x128xf32> to vector<16x128xf32>
    %35 = arith.mulf %32, %34 : vector<16x128xf32>
    %36 = vector.extract_strided_slice %2 {offsets = [0, 0], sizes = [1, 128], strides = [1, 1]} : vector<3x128xf32> to vector<1x128xf32>
    %37 = vector.broadcast %36 : vector<1x128xf32> to vector<16x128xf32>
    %38 = arith.addf %35, %37 : vector<16x128xf32>
    %c1 = arith.constant 1 : index
    %c0_16 = arith.constant 0 : index
    %c0_17 = arith.constant 0 : index
    %39 = vector.load %arg2[%c1, %c0_16, %c0_17] : memref<2x128x128xbf16, #tpu.memory_space<vmem>>, vector<1x128x128xbf16>
    %40 = vector.shape_cast %39 : vector<1x128x128xbf16> to vector<128x128xbf16>
    %41 = arith.truncf %38 : vector<16x128xf32> to vector<16x128xbf16>
    %cst_18 = arith.constant dense<0.000000e+00> : vector<16x128xf32>
    %42 = tpu.matmul %41, %40, %cst_18 {dimension_numbers = #tpu.dot_dimension_numbers<[1], [0], [0], [1], [0, 0, 1, 1], [], []>} : vector<16x128xbf16>, vector<128x128xbf16>, vector<16x128xf32> -> vector<16x128xf32>
    %43 = vector.extract_strided_slice %0 {offsets = [1, 0], sizes = [1, 128], strides = [1, 1]} : vector<2x128xf32> to vector<1x128xf32>
    %44 = vector.broadcast %43 : vector<1x128xf32> to vector<16x128xf32>
    %45 = arith.addf %42, %44 : vector<16x128xf32>
    %cst_19 = arith.constant dense<0.000000e+00> : vector<16xf32>
    %46 = vector.multi_reduction <add>, %45, %cst_19 [1] : vector<16x128xf32> to vector<16xf32>
    %47 = vector.shape_cast %46 : vector<16xf32> to vector<16x1xf32>
    %cst_20 = arith.constant 3.125000e-02 : f32
    %48 = vector.broadcast %cst_20 : f32 to vector<16x1xf32>
    %49 = arith.mulf %47, %48 : vector<16x1xf32>
    %50 = vector.broadcast %49 : vector<16x1xf32> to vector<16x128xf32>
    %51 = arith.subf %45, %50 : vector<16x128xf32>
    %52 = arith.mulf %51, %51 : vector<16x128xf32>
    %cst_21 = arith.constant 0.000000e+00 : f32
    %53 = vector.shape_cast %5 : vector<1x128xi1> to vector<1x128xi1>
    %54 = vector.broadcast %53 : vector<1x128xi1> to vector<16x128xi1>
    %55 = vector.broadcast %cst_21 : f32 to vector<16x128xf32>
    %56 = arith.select %54, %52, %55 : vector<16x128xi1>, vector<16x128xf32>
    %cst_22 = arith.constant dense<0.000000e+00> : vector<16xf32>
    %57 = vector.multi_reduction <add>, %56, %cst_22 [1] : vector<16x128xf32> to vector<16xf32>
    %58 = vector.shape_cast %57 : vector<16xf32> to vector<16x1xf32>
    %cst_23 = arith.constant 3.125000e-02 : f32
    %59 = vector.broadcast %cst_23 : f32 to vector<16x1xf32>
    %60 = arith.mulf %58, %59 : vector<16x1xf32>
    %cst_24 = arith.constant 9.99999974E-6 : f32
    %61 = vector.broadcast %cst_24 : f32 to vector<16x1xf32>
    %62 = arith.addf %60, %61 : vector<16x1xf32>
    %63 = math.rsqrt %62 : vector<16x1xf32>
    %64 = vector.broadcast %63 : vector<16x1xf32> to vector<16x128xf32>
    %65 = arith.mulf %51, %64 : vector<16x128xf32>
    %66 = vector.extract_strided_slice %1 {offsets = [1, 0], sizes = [1, 128], strides = [1, 1]} : vector<3x128xf32> to vector<1x128xf32>
    %67 = vector.broadcast %66 : vector<1x128xf32> to vector<16x128xf32>
    %68 = arith.mulf %65, %67 : vector<16x128xf32>
    %69 = vector.extract_strided_slice %2 {offsets = [1, 0], sizes = [1, 128], strides = [1, 1]} : vector<3x128xf32> to vector<1x128xf32>
    %70 = vector.broadcast %69 : vector<1x128xf32> to vector<16x128xf32>
    %71 = arith.addf %68, %70 : vector<16x128xf32>
    %cst_25 = arith.constant dense<0.000000e+00> : vector<16xf32>
    %72 = vector.multi_reduction <add>, %71, %cst_25 [1] : vector<16x128xf32> to vector<16xf32>
    %73 = vector.shape_cast %72 : vector<16xf32> to vector<16x1xf32>
    %cst_26 = arith.constant 3.125000e-02 : f32
    %74 = vector.broadcast %cst_26 : f32 to vector<16x1xf32>
    %75 = arith.mulf %73, %74 : vector<16x1xf32>
    %76 = vector.broadcast %75 : vector<16x1xf32> to vector<16x128xf32>
    %77 = arith.subf %71, %76 : vector<16x128xf32>
    %78 = arith.mulf %77, %77 : vector<16x128xf32>
    %cst_27 = arith.constant 0.000000e+00 : f32
    %79 = vector.shape_cast %5 : vector<1x128xi1> to vector<1x128xi1>
    %80 = vector.broadcast %79 : vector<1x128xi1> to vector<16x128xi1>
    %81 = vector.broadcast %cst_27 : f32 to vector<16x128xf32>
    %82 = arith.select %80, %78, %81 : vector<16x128xi1>, vector<16x128xf32>
    %cst_28 = arith.constant dense<0.000000e+00> : vector<16xf32>
    %83 = vector.multi_reduction <add>, %82, %cst_28 [1] : vector<16x128xf32> to vector<16xf32>
    %84 = vector.shape_cast %83 : vector<16xf32> to vector<16x1xf32>
    %cst_29 = arith.constant 3.125000e-02 : f32
    %85 = vector.broadcast %cst_29 : f32 to vector<16x1xf32>
    %86 = arith.mulf %84, %85 : vector<16x1xf32>
    %cst_30 = arith.constant 9.99999974E-6 : f32
    %87 = vector.broadcast %cst_30 : f32 to vector<16x1xf32>
    %88 = arith.addf %86, %87 : vector<16x1xf32>
    %89 = math.rsqrt %88 : vector<16x1xf32>
    %90 = vector.broadcast %89 : vector<16x1xf32> to vector<16x128xf32>
    %91 = arith.mulf %77, %90 : vector<16x128xf32>
    %92 = vector.extract_strided_slice %1 {offsets = [2, 0], sizes = [1, 128], strides = [1, 1]} : vector<3x128xf32> to vector<1x128xf32>
    %93 = vector.broadcast %92 : vector<1x128xf32> to vector<16x128xf32>
    %94 = arith.mulf %91, %93 : vector<16x128xf32>
    %95 = vector.extract_strided_slice %2 {offsets = [2, 0], sizes = [1, 128], strides = [1, 1]} : vector<3x128xf32> to vector<1x128xf32>
    %96 = vector.broadcast %95 : vector<1x128xf32> to vector<16x128xf32>
    %97 = arith.addf %94, %96 : vector<16x128xf32>
    %c0_31 = arith.constant 0 : index
    %c0_32 = arith.constant 0 : index
    %98 = vector.load %arg6[%c0_31, %c0_32] : memref<16x128xf32, #tpu.memory_space<vmem>>, vector<16x128xf32>
    tpu.vector_store %arg6[%c0_31, %c0_32], %97 {strides = array<i32>} : memref<16x128xf32, #tpu.memory_space<vmem>>, vector<16x128xf32>,
    return
  }
  func.func @transform_0(%arg0: i32) -> (i32, i32) {
    %c0_i32 = arith.constant 0 : i32
    %c0_i32_0 = arith.constant 0 : i32
    return %arg0, %c0_i32 : i32, i32
  }
  func.func @transform_1(%arg0: i32) -> (i32, i32, i32) {
    %c0_i32 = arith.constant 0 : i32
    %c0_i32_0 = arith.constant 0 : i32
    %c0_i32_1 = arith.constant 0 : i32
    %c0_i32_2 = arith.constant 0 : i32
    return %c0_i32, %c0_i32_0, %c0_i32_1 : i32, i32, i32
  }
  func.func @transform_2(%arg0: i32) -> (i32, i32) {
    %c0_i32 = arith.constant 0 : i32
    %c0_i32_0 = arith.constant 0 : i32
    %c0_i32_1 = arith.constant 0 : i32
    return %c0_i32, %c0_i32_0 : i32, i32
  }
  func.func @transform_3(%arg0: i32) -> (i32, i32) {
    %c0_i32 = arith.constant 0 : i32
    %c0_i32_0 = arith.constant 0 : i32
    %c0_i32_1 = arith.constant 0 : i32
    return %c0_i32, %c0_i32_0 : i32, i32
  }
  func.func @transform_4(%arg0: i32) -> (i32, i32) {
    %c0_i32 = arith.constant 0 : i32
    %c0_i32_0 = arith.constant 0 : i32
    %c0_i32_1 = arith.constant 0 : i32
    return %c0_i32, %c0_i32_0 : i32, i32
  }
  func.func @transform_5(%arg0: i32) -> (i32, i32) {
    %c0_i32 = arith.constant 0 : i32
    %c0_i32_0 = arith.constant 0 : i32
    return %arg0, %c0_i32 : i32, i32
  }
}

</mosaic_0001>

<bundles_post_ra>
// kernel: tpu_custom_call.1
= control target key start
LH: loop header
LB: loop body
LE: loop exit
PB: predicated region body
PF: predicated region fallthrough
CT: control target
= control target key end

     0   :  { %10 = vsyncpa [#allocation3], 0  ;;  %s777_s0 = inlined_call_operand.hbm [shape: bf16[16,128], index: 0, kind: input, shape index: {}]   ;;  %s778_s1 = inlined_call_operand.hbm [shape: bf16[2,128,128], index: 1, kind: input, shape index: {}]   ;;  %s779_s2 = inlined_call_operand.hbm [shape: f32[2,128], index: 2, kind: input, shape index: {}]   ;;  %s780_s3 = inlined_call_operand.vmem [shape: f32[3,128], index: 3, kind: input, shape index: {}]   ;;  %s781_s4 = inlined_call_operand.hbm [shape: f32[3,128], index: 4, kind: input, shape index: {}]   ;;  %s782_s5 = inlined_call_operand.hbm [shape: f32[16,128], index: 5, kind: output, shape index: {}]  }
   0x1   :  { %11 = vsyncpa [#allocation6], 0 }
   0x2   :  { %12 = vsyncpa [#allocation9], 0 }
   0x3   :  { %13 = vsyncpa [#allocation4], 0  ;;  %s661_s18 = smov [#allocation5]   ;;  %s662_s20 = smov [#allocation2]  }
   0x4   :  { %s31_s19 = sshll.u32 %s661_s18, 4  ;;  %s19_s21 = sshll.u32 %s662_s20, 4  ;;  %s32_s19 = int_to_ptr.vmem [resolvable:$true] %s31_s19  ;;  %s20_s21 = int_to_ptr.vmem [resolvable:$true] %s19_s21 }
   0x5   :  { %s561_s22 = scalar_lea.vmem %s32_s19, 2048  ;;  %p566_p1 = scmp.lt.s32.totalorder %s32_s19, %s32_s19 }
   0x6   :  { %p562_p0 = scmp.ne.s32.totalorder %s32_s19, %s561_s22  ;;  %p567_p2 = scmp.lt.s32.totalorder %s561_s22, %s561_s22 }
   0x8   :  { %p568_p3 = por %p567_p2, %p566_p1 }
   0xa   :  { %p569_p4 = pnand %p568_p3, %p562_p0 }
   0xc   :  { %572 = shalt.err (!%p569_p4)
}
   0xd   :  { %s663_s23 = smov 64   ;;  %s664_s24 = smov 4  }
   0xe   :  { %37 = dma.hbm_to_vmem [thread:$0]  %s778_s1, 2048, %s32_s19, [#allocation6], %s663_s23, %s663_s23, %s664_s24  }
   0xf   :  { %s581_s27 = scalar_lea.vmem %s20_s21, 128  ;;  %p586_p6 = scmp.lt.s32.totalorder %s20_s21, %s20_s21 }
  0x10   :  { %p582_p5 = scmp.ne.s32.totalorder %s20_s21, %s581_s27  ;;  %p587_p7 = scmp.lt.s32.totalorder %s581_s27, %s581_s27 }
  0x12   :  { %p588_p8 = por %p587_p7, %p586_p6 }
  0x14   :  { %p589_p9 = pnand %p588_p8, %p582_p5 }
  0x16   :  { %592 = shalt.err (!%p589_p9)
}
  0x17   :  { %25 = dma.hbm_to_vmem [thread:$0]  %s777_s0, 128, %s20_s21, [#allocation3], %s663_s23, %s663_s23, %s664_s24  }
  0x18   :  { %s665_s30 = smov [#allocation7]   ;;  %s666_s7 = smov [#allocation8]  }
  0x19   :  { %s44_s6 = sshll.u32 %s665_s30, 4  ;;  %s56_s8 = sshll.u32 %s666_s7, 4  ;;  %s45_s6 = int_to_ptr.vmem [resolvable:$true] %s44_s6  ;;  %s57_s8 = int_to_ptr.vmem [resolvable:$true] %s56_s8 }
  0x1a   :  { %s601_s9 = scalar_lea.vmem %s45_s6, 32  ;;  %p606_p11 = scmp.lt.s32.totalorder %s45_s6, %s45_s6 }
  0x1b   :  { %p602_p10 = scmp.ne.s32.totalorder %s45_s6, %s601_s9  ;;  %p607_p12 = scmp.lt.s32.totalorder %s601_s9, %s601_s9 }
  0x1d   :  { %p608_p13 = por %p607_p12, %p606_p11 }
  0x1f   :  { %p609_p0 = pnand %p608_p13, %p602_p10 }
  0x21   :  { %612 = shalt.err (!%p609_p0)
}
  0x22   :  { %47 = dma.hbm_to_vmem [thread:$0]  %s779_s2, 32, %s45_s6, [#allocation6]  }
  0x23   :  { %s621_s11 = scalar_lea.vmem %s57_s8, 64  ;;  %p626_p2 = scmp.lt.s32.totalorder %s57_s8, %s57_s8 }
  0x24   :  { %p622_p1 = scmp.ne.s32.totalorder %s57_s8, %s621_s11  ;;  %p627_p3 = scmp.lt.s32.totalorder %s621_s11, %s621_s11 }
  0x26   :  { %p628_p4 = por %p627_p3, %p626_p2 }
  0x28   :  { %p629_p5 = pnand %p628_p4, %p622_p1 }
  0x2a   :  { %632 = shalt.err (!%p629_p5)
}
  0x2b   :  { %59 = dma.hbm_to_vmem [thread:$0]  %s781_s4, 64, %s57_s8, [#allocation9]  }
  0x2c   :  { %653 = dma.done.wait [#allocation3], 128  }
  0x2d   :  { %654 = vsyncadd [#allocation3], 4294967168 }
  0x2e   :  { %655 = dma.done.wait [#allocation6], 2080  }
  0x2f   :  { %656 = vsyncadd [#allocation6], 4294965216 }
  0x30   :  { %657 = dma.done.wait [#allocation9], 64  }
  0x31   :  { %658 = vsyncadd [#allocation9], 4294967232  ;;  %v667_v0 = vmov 0.0   ;;  %vm668_vm0 = vmmov 0   ;;  %v524_v1 = vld [vmem:[#allocation5 + $0x38] sm:$0xff]   ;;  %v525_v2 = vld [vmem:[#allocation5 + $0x30] sm:$0xff]   ;;  %v76_v10 = vlaneseq }
  0x32   :  { %473 = vmatprep.subr.bf16.mxu0 %v667_v0  ;;  %489 = vmatprep.mubr.msk.bf16.mxu0 %vm668_vm0, %v667_v0  ;;  %v526_v3 = vld [vmem:[#allocation5 + $0x28] sm:$0xff]   ;;  %v527_v4 = vld [vmem:[#allocation5 + $0x20] sm:$0xff]   ;;  %v528_v5 = vld [vmem:[#allocation5 + $0x18] sm:$0xff]  }
  0x33   :  { %493 = vmatprep.subr.bf16.mxu1 %v667_v0  ;;  %509 = vmatprep.mubr.msk.bf16.mxu1 %vm668_vm0, %v667_v0  ;;  %v529_v6 = vld [vmem:[#allocation5 + $0x10] sm:$0xff]   ;;  %v530_v7 = vld [vmem:[#allocation5 + $0x8] sm:$0xff]   ;;  %v531_v8 = vld [vmem:[#allocation5] sm:$0xff]   ;;  %v725_v11 = vshrl.u32 %v76_v10, 7  ;;  %v735_v23 = vand.u32 127, %v76_v10 }
  0x34   :  { %474 = vmatpush3.bf16.msra.mxu0 %v524_v1  ;;  %v532_v9 = vld [vmem:[#allocation2] sm:$0xff]   ;;  %v730_v13 = vld [vmem:[#allocation7] sm:$0x3]  ;;  %v534_v33 = vld [vmem:[#allocation5 + $0x70] sm:$0xff]  }
  0x35   :  { %475 = vmatprep.subr.bf16.mxu0 %v667_v0  ;;  %v728_v12 = vsub.s32 0, %v725_v11  ;;  %v533_v21 = vld [vmem:[#allocation5 + $0x78] sm:$0xff]   ;;  %vm78_vm1 = vcmp.lt.s32.totalorder %v735_v23, 32  ;;  %v535_v34 = vld [vmem:[#allocation5 + $0x68] sm:$0xff]   ;;  %v536_v35 = vld [vmem:[#allocation5 + $0x60] sm:$0xff]   ;;  %v254_v59 = vsub.s32 1, %v725_v11 }
  0x36   :  { %494 = vmatpush3.bf16.msra.mxu1 %v533_v21  ;;  %v537_v36 = vld [vmem:[#allocation5 + $0x58] sm:$0xff]   ;;  %v538_v37 = vld [vmem:[#allocation5 + $0x50] sm:$0xff]   ;;  %v539_v38 = vld [vmem:[#allocation5 + $0x48] sm:$0xff]  }
  0x37   :  { %v100_v14 = vrot.slane %v730_v13, %v728_v12  ;;  %495 = vmatprep.subr.bf16.mxu1 %v667_v0  ;;  %v540_v39 = vld [vmem:[#allocation5 + $0x40] sm:$0xff]   ;;  %v751_v46 = vld [vmem:[%s780_s3] sm:$0x7]  ;;  %v255_v60 = vrot.slane %v730_v13, %v254_v59  ;;  %s669_s3 = smov [#allocation10]  }
  0x38   :  { %476 = vmatpush3.bf16.msra.mxu0 %v525_v2  ;;  %v225_v49 = vrot.slane %v751_v46, %v728_v12  ;;  %v755_v50 = vld [vmem:[#allocation8] sm:$0x7]  ;;  %s424_s13 = sshll.u32 %s669_s3, 4  ;;  %s425_s13 = int_to_ptr.vmem [resolvable:$true] %s424_s13 }
  0x39   :  { %477 = vmatprep.subr.bf16.mxu0 %v667_v0  ;;  %v231_v54 = vrot.slane %v755_v50, %v728_v12  ;;  %s633_s14 = scalar_lea.vmem %s425_s13, 256  ;;  %p638_p7 = scmp.lt.s32.totalorder %s425_s13, %s425_s13 }
  0x3a   :  { %496 = vmatpush3.bf16.msra.mxu1 %v534_v33  ;;  %p634_p6 = scmp.ne.s32.totalorder %s425_s13, %s633_s14  ;;  %p639_p8 = scmp.lt.s32.totalorder %s633_s14, %s633_s14 }
  0x3b   :  { %497 = vmatprep.subr.bf16.mxu1 %v667_v0 }
  0x3c   :  { %478 = vmatpush3.bf16.msra.mxu0 %v526_v3  ;;  %p640_p9 = por %p639_p8, %p638_p7 }
  0x3d   :  { %479 = vmatprep.subr.bf16.mxu0 %v667_v0 }
  0x3e   :  { %498 = vmatpush3.bf16.msra.mxu1 %v535_v34  ;;  %p641_p10 = pnand %p640_p9, %p634_p6 }
  0x3f   :  { %499 = vmatprep.subr.bf16.mxu1 %v667_v0 }
  0x40   :  { %480 = vmatpush3.bf16.msra.mxu0 %v527_v4 }
  0x41   :  { %481 = vmatprep.subr.bf16.mxu0 %v667_v0 }
  0x42   :  { %500 = vmatpush3.bf16.msra.mxu1 %v536_v35 }
  0x43   :  { %501 = vmatprep.subr.bf16.mxu1 %v667_v0 }
  0x44   :  { %482 = vmatpush3.bf16.msra.mxu0 %v528_v5 }
  0x45   :  { %483 = vmatprep.subr.bf16.mxu0 %v667_v0 }
  0x46   :  { %502 = vmatpush3.bf16.msra.mxu1 %v537_v36 }
  0x47   :  { %503 = vmatprep.subr.bf16.mxu1 %v667_v0 }
  0x48   :  { %484 = vmatpush3.bf16.msra.mxu0 %v529_v6 }
  0x49   :  { %485 = vmatprep.subr.bf16.mxu0 %v667_v0 }
  0x4a   :  { %504 = vmatpush3.bf16.msra.mxu1 %v538_v37 }
  0x4b   :  { %505 = vmatprep.subr.bf16.mxu1 %v667_v0 }
  0x4c   :  { %486 = vmatpush3.bf16.msra.mxu0 %v530_v7 }
  0x4d   :  { %487 = vmatprep.subr.bf16.mxu0 %v667_v0 }
  0x4e   :  { %506 = vmatpush3.bf16.msra.mxu1 %v539_v38 }
  0x4f   :  { %507 = vmatprep.subr.bf16.mxu1 %v667_v0 }
  0x50   :  { %488 = vmatpush3.bf16.msra.mxu0 %v531_v8 }
  0x52   :  { %508 = vmatpush3.bf16.msra.mxu1 %v540_v39 }
  0x53   :  { %490 = vmatmul.mubr.bf16.vlgmr.msra.gmra.mxu0 %v532_v9 }
 0x113   :  { %v189_v15 = vpop.f32.mrf.mxu0 }
 0x114   :  { %v190_v16 = vadd.f32 %v189_v15, %v100_v14 }
 0x115   :  { %v491_v17 = vpop.f32.mrf.mxu0 }
 0x116   :  { %196 = vadd.xlane.f32.xlu0 %v190_v16 }
 0x117   :  { %v192_v18 = vpop.f32.mrf.mxu0 }
 0x118   :  { %v193_v19 = vadd.f32 %v192_v18, %v100_v14 }
 0x119   :  { %v492_v20 = vpop.f32.mrf.mxu0 }
 0x11a   :  { %198 = vadd.xlane.f32.xlu0 %v193_v19  ;;  %v372_v20 = vrot.slane %v751_v46, %v254_v59 }
 0x19f   :  { %v197_v22 = vpop.xlane.xlu0 %196 }
 0x1a0   :  { %v200_v24 = vmul.f32 0.03125, %v197_v22 }
 0x1a2   :  { %v202_v25 = vsub.f32 %v190_v16, %v200_v24  ;;  %v378_v24 = vrot.slane %v755_v50, %v254_v59 }
 0x1a3   :  { %v199_v26 = vpop.xlane.xlu0 %198 }
 0x1a4   :  { %v201_v27 = vmul.f32 0.03125, %v199_v26  ;;  %v204_v28 = vmul.f32 %v202_v25, %v202_v25 }
 0x1a6   :  { %v203_v29 = vsub.f32 %v193_v19, %v201_v27  ;;  %v208_v30 = vsel %vm78_vm1, %v204_v28, 0.0 }
 0x1a7   :  { %210 = vadd.xlane.f32.xlu1 %v208_v30 }
 0x1a8   :  { %v205_v31 = vmul.f32 %v203_v29, %v203_v29 }
 0x1aa   :  { %v209_v32 = vsel %vm78_vm1, %v205_v31, 0.0 }
 0x1ab   :  { %212 = vadd.xlane.f32.xlu1 %v209_v32 }
 0x230   :  { %v211_v40 = vpop.xlane.xlu1 %210 }
 0x231   :  { %v214_v41 = vmul.f32 0.03125, %v211_v40 }
 0x233   :  { %v216_v42 = vadd.f32 1e-05, %v214_v41 }
 0x234   :  { %v213_v43 = vpop.xlane.xlu1 %212 }
 0x235   :  { %541 = vrsqrt.f32 %v216_v42  ;;  %v215_v44 = vmul.f32 0.03125, %v213_v43 }
 0x237   :  { %v217_v45 = vadd.f32 1e-05, %v215_v44 }
 0x239   :  { %543 = vrsqrt.f32 %v217_v45 }
 0x242   :  { %v542_v47 = vpop.eup %541 }
 0x243   :  { %v220_v48 = vmul.f32 %v542_v47, %v202_v25 }
 0x245   :  { %v226_v53 = vmul.f32 %v225_v49, %v220_v48  ;;  %v407_v48 = vsub.s32 2, %v725_v11 }
 0x246   :  { %v544_v51 = vpop.eup %543 }
 0x247   :  { %v221_v52 = vmul.f32 %v544_v51, %v203_v29  ;;  %v232_v56 = vadd.f32 %v231_v54, %v226_v53  ;;  %v414_v53 = vrot.slane %v755_v50, %v407_v48 }
 0x249   :  { %v227_v55 = vmul.f32 %v225_v49, %v221_v52  ;;  %v408_v49 = vrot.slane %v751_v46, %v407_v48 }
 0x24b   :  { %v233_v57 = vadd.f32 %v231_v54, %v227_v55 }
 0x24d   :  { %v251_v58 = vpack.c.bf16 %v233_v57, %v232_v56 }
 0x24f   :  { %510 = vmatmul.mubr.bf16.vlgmr.msra.gmra.mxu1 %v251_v58 }
 0x30f   :  { %v338_v61 = vpop.f32.mrf.mxu1 }
 0x310   :  { %v339_v62 = vadd.f32 %v338_v61, %v255_v60 }
 0x311   :  { %v511_v63 = vpop.f32.mrf.mxu1 }
 0x312   :  { %345 = vadd.xlane.f32.xlu0 %v339_v62 }
 0x313   :  { %v341_v0 = vpop.f32.mrf.mxu1 }
 0x314   :  { %v342_v1 = vadd.f32 %v341_v0, %v255_v60 }
 0x315   :  { %v512_v2 = vpop.f32.mrf.mxu1 }
 0x316   :  { %347 = vadd.xlane.f32.xlu1 %v342_v1 }
 0x39b   :  { %v346_v3 = vpop.xlane.xlu0 %345 }
 0x39c   :  { %v349_v4 = vmul.f32 0.03125, %v346_v3 }
 0x39e   :  { %v351_v5 = vsub.f32 %v339_v62, %v349_v4 }
 0x39f   :  { %v348_v6 = vpop.xlane.xlu1 %347 }
 0x3a0   :  { %v350_v7 = vmul.f32 0.03125, %v348_v6  ;;  %v353_v8 = vmul.f32 %v351_v5, %v351_v5 }
 0x3a2   :  { %v352_v9 = vsub.f32 %v342_v1, %v350_v7  ;;  %v355_v10 = vsel %vm78_vm1, %v353_v8, 0.0 }
 0x3a3   :  { %357 = vadd.xlane.f32.xlu0 %v355_v10 }
 0x3a4   :  { %v354_v12 = vmul.f32 %v352_v9, %v352_v9 }
 0x3a6   :  { %v356_v13 = vsel %vm78_vm1, %v354_v12, 0.0 }
 0x3a7   :  { %359 = vadd.xlane.f32.xlu1 %v356_v13 }
 0x42c   :  { %v358_v14 = vpop.xlane.xlu0 %357 }
 0x42d   :  { %v361_v15 = vmul.f32 0.03125, %v358_v14 }
 0x42f   :  { %v363_v16 = vadd.f32 1e-05, %v361_v15 }
 0x430   :  { %v360_v17 = vpop.xlane.xlu1 %359 }
 0x431   :  { %545 = vrsqrt.f32 %v363_v16  ;;  %v362_v18 = vmul.f32 0.03125, %v360_v17 }
 0x433   :  { %v364_v19 = vadd.f32 1e-05, %v362_v18 }
 0x435   :  { %547 = vrsqrt.f32 %v364_v19 }
 0x43e   :  { %v546_v21 = vpop.eup %545 }
 0x43f   :  { %v367_v22 = vmul.f32 %v546_v21, %v351_v5 }
 0x441   :  { %v373_v25 = vmul.f32 %v372_v20, %v367_v22 }
 0x442   :  { %v548_v26 = vpop.eup %547 }
 0x443   :  { %v379_v27 = vadd.f32 %v378_v24, %v373_v25  ;;  %v368_v28 = vmul.f32 %v548_v26, %v352_v9 }
 0x445   :  { %381 = vadd.xlane.f32.xlu0 %v379_v27  ;;  %v374_v29 = vmul.f32 %v372_v20, %v368_v28 }
 0x447   :  { %v380_v30 = vadd.f32 %v378_v24, %v374_v29 }
 0x449   :  { %383 = vadd.xlane.f32.xlu1 %v380_v30 }
 0x4ce   :  { %v382_v31 = vpop.xlane.xlu0 %381 }
 0x4cf   :  { %v385_v32 = vmul.f32 0.03125, %v382_v31 }
 0x4d1   :  { %v387_v33 = vsub.f32 %v379_v27, %v385_v32 }
 0x4d2   :  { %v384_v34 = vpop.xlane.xlu1 %383 }
 0x4d3   :  { %v386_v35 = vmul.f32 0.03125, %v384_v34  ;;  %v389_v36 = vmul.f32 %v387_v33, %v387_v33 }
 0x4d5   :  { %v388_v37 = vsub.f32 %v380_v30, %v386_v35  ;;  %v391_v38 = vsel %vm78_vm1, %v389_v36, 0.0 }
 0x4d6   :  { %393 = vadd.xlane.f32.xlu0 %v391_v38 }
 0x4d7   :  { %v390_v39 = vmul.f32 %v388_v37, %v388_v37 }
 0x4d9   :  { %v392_v40 = vsel %vm78_vm1, %v390_v39, 0.0 }
 0x4da   :  { %395 = vadd.xlane.f32.xlu1 %v392_v40 }
 0x55f   :  { %v394_v41 = vpop.xlane.xlu0 %393 }
 0x560   :  { %v397_v42 = vmul.f32 0.03125, %v394_v41 }
 0x562   :  { %v399_v43 = vadd.f32 1e-05, %v397_v42 }
 0x563   :  { %v396_v44 = vpop.xlane.xlu1 %395 }
 0x564   :  { %549 = vrsqrt.f32 %v399_v43  ;;  %v398_v45 = vmul.f32 0.03125, %v396_v44 }
 0x566   :  { %v400_v47 = vadd.f32 1e-05, %v398_v45 }
 0x568   :  { %551 = vrsqrt.f32 %v400_v47 }
 0x571   :  { %v550_v51 = vpop.eup %549 }
 0x572   :  { %v403_v52 = vmul.f32 %v550_v51, %v387_v33 }
 0x574   :  { %v409_v54 = vmul.f32 %v408_v49, %v403_v52 }
 0x575   :  { %v552_v23 = vpop.eup %551 }
 0x576   :  { %v404_v55 = vmul.f32 %v552_v23, %v388_v37  ;;  %v415_v56 = vadd.f32 %v414_v53, %v409_v54 }
 0x578   :  { %v410_v57 = vmul.f32 %v408_v49, %v404_v55  ;;  %417 = vst [vmem:[#allocation10] sm:$0xff] %v415_v56 }
 0x57a   :  { %v416_v58 = vadd.f32 %v414_v53, %v410_v57 }
 0x57c   :  { %418 = vst [vmem:[#allocation10 + $0x8] sm:$0xff] %v416_v58 }
 0x57d   :  { %644 = shalt.err (!%p641_p10)
}
 0x57e   :  { %s670_s15 = smov 128   ;;  %s671_s16 = smov 8  }
 0x57f   :  { %430 = dma.vmem_to_hbm [thread:$0]  %s425_s13, 256, %s782_s5, [#allocation4], %s670_s15, %s670_s15, %s671_s16  }
 0x580   :  { %659 = dma.done.wait [#allocation4], 256  }
 0x581   :  { %660 = vsyncadd [#allocation4], 4294967040 }
 0x582   :  { %434 = vsyncpa [#allocation3], 1 }
 0x583   :  { %435 = vsyncpa [#allocation6], 1 }
 0x584   :  { %436 = vsyncpa [#allocation9], 1 }
 0x585   :  { %437 = vsyncpa [#allocation4], 1 }

</bundles_post_ra>
